<compile_context>
chip_gen: v7x
topology: tpu7x:2x2x1
jax: 0.10.0
libtpu: 0.0.40
codegen_flags: <defaults>
</compile_context>

<pallas_src>
import jax
import jax.numpy as jnp
from jax import lax
from jax.experimental import pallas as pl
from jax.experimental.pallas import tpu as pltpu


def _round_up(x, m):
    return ((x + m - 1) // m) * m


def _vmem_budget_bytes():
    """Per-generation budget for (resident table + pipelined blocks + headroom)."""
    try:
        phys = int(pltpu.get_tpu_info().vmem_capacity_bytes)  # 64 MiB v7x, 128 MiB v5e/v6e
    except Exception:
        phys = 64 * 1024 * 1024                               # conservative (v7x) default
    return phys // 2                                          # ~32 MiB v7x, ~64 MiB v5e/v6e


def _resident_gather_kernel(ids_ref, table_ref, o_ref):
    # ids_ref:   (n_pad,) int32 flattened token ids in SMEM (scalar prefetch)
    # table_ref: (V, E)   embedding table, VMEM-resident (constant index_map)
    # o_ref:     (rows, k*E) lane-packed output block in VMEM
    e = table_ref.shape[1]
    rows = o_ref.shape[0]
    k = o_ref.shape[1] // e              # tokens packed per 128-lane output row
    base = pl.program_id(0) * rows * k   # first token of this block (hoisted)

    def body(r, carry):
        # k tokens per output row, statically unrolled -> static lane offsets.
        for j in range(k):
            row = ids_ref[base + r * k + j]
            o_ref[pl.ds(r, 1), j * e:(j + 1) * e] = table_ref[pl.ds(row, 1), :]
        return carry

    # Moderate unroll keeps the vld/vst slots fed without exploding code size.
    # Padded tail tokens (id 0) just copy row 0; they are sliced off outside.
    lax.fori_loop(0, rows, body, 0, unroll=8)


def _hbm_gather_kernel(ids_ref, table_hbm, o_ref, copy_sem):
    # Slow path for tables that do not fit VMEM.
    # ids_ref:   (n_pad,) int32 flattened token ids in SMEM (scalar prefetch)
    # table_hbm: (V, E)   embedding table, raw HBM ref (no auto-DMA)
    # o_ref:     (tb, E)  output block in VMEM (pipelined)
    # copy_sem:  one DMA semaphore shared by all row copies of this block
    tb = o_ref.shape[0]
    base = pl.program_id(0) * tb

    def issue(t, carry):
        row = ids_ref[base + t]
        pltpu.make_async_copy(
            table_hbm.at[pl.ds(row, 1), :],
            o_ref.at[pl.ds(t, 1), :],
            copy_sem,
        ).start()
        return carry

    lax.fori_loop(0, tb, issue, 0, unroll=8)

    # Aggregate drain: DMA semaphores count bytes and the tb issued copies
    # together cover exactly the o_ref block, so one wait whose descriptor
    # byte count equals the whole block drains all of them at once
    # (O(1) instead of tb per-row waits).
    pltpu.make_async_copy(o_ref, o_ref, copy_sem).wait()


def embedder_forward(x, table, *, block_tokens=2048):
    """Pallas equivalent of torch.nn.Embedding(num_nodes, emb_size)(x)."""
    orig_shape = tuple(x.shape)
    n = 1
    for d in orig_shape:
        n *= int(d)
    v, e = table.shape
    itemsize = jnp.dtype(table.dtype).itemsize

    budget = _vmem_budget_bytes()
    table_bytes = v * e * itemsize
    resident = table_bytes + (2 << 20) <= budget  # table (+ headroom) fits VMEM

    # Lane packing: for E < 128 pack k tokens per 128-lane output row so the
    # output block uses full (8, 128) tiles (dense vst + dense writeback DMA).
    if resident and e < 128 and 128 % e == 0:
        k = 128 // e
    else:
        k = 1

    # Token-block size: large enough to amortize the per-grid-step overhead,
    # clamped for tiny inputs.  Multiple of 8*k keeps the output block's
    # sublane dim a multiple of 8.
    gran = 8 * k
    tb = min(block_tokens, _round_up(n, gran))
    tb = max(_round_up(tb, gran), gran)
    n_pad = _round_up(n, tb)
    grid = (n_pad // tb,)

    idx_flat = x.reshape(n).astype(jnp.int32)
    # torch.nn.Embedding raises on out-of-range ids; an OOB gather here would
    # read garbage (or fault on the DMA path), so ids are clamped instead.
    # TODO(synk): OOB ids are clamped to [0, V-1] rather than raising like torch.
    idx_flat = jnp.clip(idx_flat, 0, v - 1)
    if n_pad != n:
        # Padded tokens gather row 0; they are sliced off below.
        idx_flat = jnp.pad(idx_flat, (0, n_pad - n))
    # TODO(synk): ids are scalar-prefetched whole into SMEM (pads to
    # next_pow2(4N) bytes); for very large token counts (>~256K) switch to
    # per-block SMEM id tiles to avoid SMEM pressure.

    if resident:
        out_block = (tb // k, k * e)
        needed = table_bytes + 2 * out_block[0] * out_block[1] * itemsize + (1 << 20)
        vmem_limit = int(min(budget, max(needed, 16 << 20)))
        out = pl.pallas_call(
            _resident_gather_kernel,
            out_shape=jax.ShapeDtypeStruct((n_pad // k, k * e), table.dtype),
            grid_spec=pltpu.PrefetchScalarGridSpec(
                num_scalar_prefetch=1,                      # ids -> SMEM
                grid=grid,
                in_specs=[
                    # Full table, constant block index -> DMA'd into VMEM once
                    # and kept resident across all grid steps.
                    pl.BlockSpec((v, e), lambda i, ids: (0, 0)),
                ],
                out_specs=pl.BlockSpec(out_block, lambda i, ids: (i, 0)),
            ),
            compiler_params=pltpu.CompilerParams(
                dimension_semantics=("parallel",),          # shard tokens across TCs
                vmem_limit_bytes=vmem_limit,
            ),
        )(idx_flat, table)
        out = out.reshape(n_pad, e)
    else:
        # Table too large for this generation's VMEM: HBM row-DMA gather.
        needed = 2 * tb * e * itemsize + (1 << 20)
        vmem_limit = int(min(budget, max(needed, 16 << 20)))
        out = pl.pallas_call(
            _hbm_gather_kernel,
            out_shape=jax.ShapeDtypeStruct((n_pad, e), table.dtype),
            grid_spec=pltpu.PrefetchScalarGridSpec(
                num_scalar_prefetch=1,                      # ids -> SMEM
                grid=grid,
                in_specs=[pl.BlockSpec(memory_space=pl.ANY)],  # table stays in HBM
                out_specs=pl.BlockSpec((tb, e), lambda i, ids: (i, 0)),
                scratch_shapes=[pltpu.SemaphoreType.DMA(())],
            ),
            compiler_params=pltpu.CompilerParams(
                dimension_semantics=("parallel",),
                vmem_limit_bytes=vmem_limit,
            ),
        )(idx_flat, table)

    return out[:n].reshape(orig_shape + (e,))


if __name__ == "__main__":
    # Small shapes consistent with the module: num_nodes=64, emb_size=32,
    # index tensor x of shape (batch=2, seq=8).
    num_nodes, emb_size = 64, 32
    batch, seq = 2, 8

    key = jax.random.PRNGKey(0)
    k_tab, k_idx = jax.random.split(key)

    # nn.Embedding default init: weight ~ N(0, 1)
    table = jax.random.normal(k_tab, (num_nodes, emb_size), dtype=jnp.float32)
    x = jax.random.randint(k_idx, (batch, seq), 0, num_nodes, dtype=jnp.int32)

    out = embedder_forward(x, table)
    out = jax.block_until_ready(out)

    # Reference: plain gather (what nn.Embedding does).
    ref = table[x]
    assert out.shape == (batch, seq, emb_size)
    assert jnp.allclose(out, ref, atol=1e-6), "mismatch vs reference gather"

    print("KERNEL_OK")
</pallas_src>

<mosaic_0001>
module attributes {stable_mosaic.version = 11 : i64} {
  func.func @_resident_gather_kernel(%arg0: i32, %arg1: memref<32xi32, #tpu.memory_space<smem>>, %arg2: memref<64x32xf32, #tpu.memory_space<vmem>>, %arg3: memref<8x128xf32, #tpu.memory_space<vmem>>) attributes {dimension_semantics = [#tpu.dimension_semantics<parallel>], iteration_bounds = array<i64: 1>, scalar_prefetch = 1 : i64, scratch_operands = 0 : i64, tpu.core_type = #tpu.core_type<tc>, window_params = [{pipeline_mode = #tpu.pipeline_mode<synchronous>, transform_indices = @transform_0, window_bounds = array<i64: 64, 32>}, {transform_indices = @transform_1, window_bounds = array<i64: 8, 128>}]} {
    %c8_i32 = arith.constant 8 : i32
    %0 = arith.muli %arg0, %c8_i32 : i32
    %c4_i32 = arith.constant 4 : i32
    %1 = arith.muli %0, %c4_i32 : i32
    %c0_i32 = arith.constant 0 : i32
    %c4_i32_0 = arith.constant 4 : i32
    %2 = arith.muli %c0_i32, %c4_i32_0 : i32
    %3 = arith.addi %1, %2 : i32
    %c0_i32_1 = arith.constant 0 : i32
    %4 = arith.addi %3, %c0_i32_1 : i32
    %5 = arith.index_cast %4 : i32 to index
    %6 = memref.load %arg1[%5] : memref<32xi32, #tpu.memory_space<smem>>
    %7 = arith.index_cast %6 : i32 to index
    %c0 = arith.constant 0 : index
    %8 = vector.load %arg2[%7, %c0] : memref<64x32xf32, #tpu.memory_space<vmem>>, vector<1x32xf32>
    %9 = arith.index_cast %c0_i32 : i32 to index
    %c0_2 = arith.constant 0 : index
    %10 = vector.load %arg3[%9, %c0_2] : memref<8x128xf32, #tpu.memory_space<vmem>>, vector<1x32xf32>
    tpu.vector_store %arg3[%9, %c0_2], %8 {strides = array<i32>} : memref<8x128xf32, #tpu.memory_space<vmem>>, vector<1x32xf32>,
    %c4_i32_3 = arith.constant 4 : i32
    %11 = arith.muli %c0_i32, %c4_i32_3 : i32
    %12 = arith.addi %1, %11 : i32
    %c1_i32 = arith.constant 1 : i32
    %13 = arith.addi %12, %c1_i32 : i32
    %14 = arith.index_cast %13 : i32 to index
    %15 = memref.load %arg1[%14] : memref<32xi32, #tpu.memory_space<smem>>
    %16 = arith.index_cast %15 : i32 to index
    %c0_4 = arith.constant 0 : index
    %17 = vector.load %arg2[%16, %c0_4] : memref<64x32xf32, #tpu.memory_space<vmem>>, vector<1x32xf32>
    %18 = arith.index_cast %c0_i32 : i32 to index
    %c32 = arith.constant 32 : index
    %19 = vector.load %arg3[%18, %c32] : memref<8x128xf32, #tpu.memory_space<vmem>>, vector<1x32xf32>
    tpu.vector_store %arg3[%18, %c32], %17 {strides = array<i32>} : memref<8x128xf32, #tpu.memory_space<vmem>>, vector<1x32xf32>,
    %c4_i32_5 = arith.constant 4 : i32
    %20 = arith.muli %c0_i32, %c4_i32_5 : i32
    %21 = arith.addi %1, %20 : i32
    %c2_i32 = arith.constant 2 : i32
    %22 = arith.addi %21, %c2_i32 : i32
    %23 = arith.index_cast %22 : i32 to index
    %24 = memref.load %arg1[%23] : memref<32xi32, #tpu.memory_space<smem>>
    %25 = arith.index_cast %24 : i32 to index
    %c0_6 = arith.constant 0 : index
    %26 = vector.load %arg2[%25, %c0_6] : memref<64x32xf32, #tpu.memory_space<vmem>>, vector<1x32xf32>
    %27 = arith.index_cast %c0_i32 : i32 to index
    %c64 = arith.constant 64 : index
    %28 = vector.load %arg3[%27, %c64] : memref<8x128xf32, #tpu.memory_space<vmem>>, vector<1x32xf32>
    tpu.vector_store %arg3[%27, %c64], %26 {strides = array<i32>} : memref<8x128xf32, #tpu.memory_space<vmem>>, vector<1x32xf32>,
    %c4_i32_7 = arith.constant 4 : i32
    %29 = arith.muli %c0_i32, %c4_i32_7 : i32
    %30 = arith.addi %1, %29 : i32
    %c3_i32 = arith.constant 3 : i32
    %31 = arith.addi %30, %c3_i32 : i32
    %32 = arith.index_cast %31 : i32 to index
    %33 = memref.load %arg1[%32] : memref<32xi32, #tpu.memory_space<smem>>
    %34 = arith.index_cast %33 : i32 to index
    %c0_8 = arith.constant 0 : index
    %35 = vector.load %arg2[%34, %c0_8] : memref<64x32xf32, #tpu.memory_space<vmem>>, vector<1x32xf32>
    %36 = arith.index_cast %c0_i32 : i32 to index
    %c96 = arith.constant 96 : index
    %37 = vector.load %arg3[%36, %c96] : memref<8x128xf32, #tpu.memory_space<vmem>>, vector<1x32xf32>
    tpu.vector_store %arg3[%36, %c96], %35 {strides = array<i32>} : memref<8x128xf32, #tpu.memory_space<vmem>>, vector<1x32xf32>,
    %c1_i32_9 = arith.constant 1 : i32
    %c4_i32_10 = arith.constant 4 : i32
    %38 = arith.muli %c1_i32_9, %c4_i32_10 : i32
    %39 = arith.addi %1, %38 : i32
    %c0_i32_11 = arith.constant 0 : i32
    %40 = arith.addi %39, %c0_i32_11 : i32
    %41 = arith.index_cast %40 : i32 to index
    %42 = memref.load %arg1[%41] : memref<32xi32, #tpu.memory_space<smem>>
    %43 = arith.index_cast %42 : i32 to index
    %c0_12 = arith.constant 0 : index
    %44 = vector.load %arg2[%43, %c0_12] : memref<64x32xf32, #tpu.memory_space<vmem>>, vector<1x32xf32>
    %45 = arith.index_cast %c1_i32_9 : i32 to index
    %c0_13 = arith.constant 0 : index
    %46 = vector.load %arg3[%45, %c0_13] : memref<8x128xf32, #tpu.memory_space<vmem>>, vector<1x32xf32>
    tpu.vector_store %arg3[%45, %c0_13], %44 {strides = array<i32>} : memref<8x128xf32, #tpu.memory_space<vmem>>, vector<1x32xf32>,
    %c4_i32_14 = arith.constant 4 : i32
    %47 = arith.muli %c1_i32_9, %c4_i32_14 : i32
    %48 = arith.addi %1, %47 : i32
    %c1_i32_15 = arith.constant 1 : i32
    %49 = arith.addi %48, %c1_i32_15 : i32
    %50 = arith.index_cast %49 : i32 to index
    %51 = memref.load %arg1[%50] : memref<32xi32, #tpu.memory_space<smem>>
    %52 = arith.index_cast %51 : i32 to index
    %c0_16 = arith.constant 0 : index
    %53 = vector.load %arg2[%52, %c0_16] : memref<64x32xf32, #tpu.memory_space<vmem>>, vector<1x32xf32>
    %54 = arith.index_cast %c1_i32_9 : i32 to index
    %c32_17 = arith.constant 32 : index
    %55 = vector.load %arg3[%54, %c32_17] : memref<8x128xf32, #tpu.memory_space<vmem>>, vector<1x32xf32>
    tpu.vector_store %arg3[%54, %c32_17], %53 {strides = array<i32>} : memref<8x128xf32, #tpu.memory_space<vmem>>, vector<1x32xf32>,
    %c4_i32_18 = arith.constant 4 : i32
    %56 = arith.muli %c1_i32_9, %c4_i32_18 : i32
    %57 = arith.addi %1, %56 : i32
    %c2_i32_19 = arith.constant 2 : i32
    %58 = arith.addi %57, %c2_i32_19 : i32
    %59 = arith.index_cast %58 : i32 to index
    %60 = memref.load %arg1[%59] : memref<32xi32, #tpu.memory_space<smem>>
    %61 = arith.index_cast %60 : i32 to index
    %c0_20 = arith.constant 0 : index
    %62 = vector.load %arg2[%61, %c0_20] : memref<64x32xf32, #tpu.memory_space<vmem>>, vector<1x32xf32>
    %63 = arith.index_cast %c1_i32_9 : i32 to index
    %c64_21 = arith.constant 64 : index
    %64 = vector.load %arg3[%63, %c64_21] : memref<8x128xf32, #tpu.memory_space<vmem>>, vector<1x32xf32>
    tpu.vector_store %arg3[%63, %c64_21], %62 {strides = array<i32>} : memref<8x128xf32, #tpu.memory_space<vmem>>, vector<1x32xf32>,
    %c4_i32_22 = arith.constant 4 : i32
    %65 = arith.muli %c1_i32_9, %c4_i32_22 : i32
    %66 = arith.addi %1, %65 : i32
    %c3_i32_23 = arith.constant 3 : i32
    %67 = arith.addi %66, %c3_i32_23 : i32
    %68 = arith.index_cast %67 : i32 to index
    %69 = memref.load %arg1[%68] : memref<32xi32, #tpu.memory_space<smem>>
    %70 = arith.index_cast %69 : i32 to index
    %c0_24 = arith.constant 0 : index
    %71 = vector.load %arg2[%70, %c0_24] : memref<64x32xf32, #tpu.memory_space<vmem>>, vector<1x32xf32>
    %72 = arith.index_cast %c1_i32_9 : i32 to index
    %c96_25 = arith.constant 96 : index
    %73 = vector.load %arg3[%72, %c96_25] : memref<8x128xf32, #tpu.memory_space<vmem>>, vector<1x32xf32>
    tpu.vector_store %arg3[%72, %c96_25], %71 {strides = array<i32>} : memref<8x128xf32, #tpu.memory_space<vmem>>, vector<1x32xf32>,
    %c2_i32_26 = arith.constant 2 : i32
    %c4_i32_27 = arith.constant 4 : i32
    %74 = arith.muli %c2_i32_26, %c4_i32_27 : i32
    %75 = arith.addi %1, %74 : i32
    %c0_i32_28 = arith.constant 0 : i32
    %76 = arith.addi %75, %c0_i32_28 : i32
    %77 = arith.index_cast %76 : i32 to index
    %78 = memref.load %arg1[%77] : memref<32xi32, #tpu.memory_space<smem>>
    %79 = arith.index_cast %78 : i32 to index
    %c0_29 = arith.constant 0 : index
    %80 = vector.load %arg2[%79, %c0_29] : memref<64x32xf32, #tpu.memory_space<vmem>>, vector<1x32xf32>
    %81 = arith.index_cast %c2_i32_26 : i32 to index
    %c0_30 = arith.constant 0 : index
    %82 = vector.load %arg3[%81, %c0_30] : memref<8x128xf32, #tpu.memory_space<vmem>>, vector<1x32xf32>
    tpu.vector_store %arg3[%81, %c0_30], %80 {strides = array<i32>} : memref<8x128xf32, #tpu.memory_space<vmem>>, vector<1x32xf32>,
    %c4_i32_31 = arith.constant 4 : i32
    %83 = arith.muli %c2_i32_26, %c4_i32_31 : i32
    %84 = arith.addi %1, %83 : i32
    %c1_i32_32 = arith.constant 1 : i32
    %85 = arith.addi %84, %c1_i32_32 : i32
    %86 = arith.index_cast %85 : i32 to index
    %87 = memref.load %arg1[%86] : memref<32xi32, #tpu.memory_space<smem>>
    %88 = arith.index_cast %87 : i32 to index
    %c0_33 = arith.constant 0 : index
    %89 = vector.load %arg2[%88, %c0_33] : memref<64x32xf32, #tpu.memory_space<vmem>>, vector<1x32xf32>
    %90 = arith.index_cast %c2_i32_26 : i32 to index
    %c32_34 = arith.constant 32 : index
    %91 = vector.load %arg3[%90, %c32_34] : memref<8x128xf32, #tpu.memory_space<vmem>>, vector<1x32xf32>
    tpu.vector_store %arg3[%90, %c32_34], %89 {strides = array<i32>} : memref<8x128xf32, #tpu.memory_space<vmem>>, vector<1x32xf32>,
    %c4_i32_35 = arith.constant 4 : i32
    %92 = arith.muli %c2_i32_26, %c4_i32_35 : i32
    %93 = arith.addi %1, %92 : i32
    %c2_i32_36 = arith.constant 2 : i32
    %94 = arith.addi %93, %c2_i32_36 : i32
    %95 = arith.index_cast %94 : i32 to index
    %96 = memref.load %arg1[%95] : memref<32xi32, #tpu.memory_space<smem>>
    %97 = arith.index_cast %96 : i32 to index
    %c0_37 = arith.constant 0 : index
    %98 = vector.load %arg2[%97, %c0_37] : memref<64x32xf32, #tpu.memory_space<vmem>>, vector<1x32xf32>
    %99 = arith.index_cast %c2_i32_26 : i32 to index
    %c64_38 = arith.constant 64 : index
    %100 = vector.load %arg3[%99, %c64_38] : memref<8x128xf32, #tpu.memory_space<vmem>>, vector<1x32xf32>
    tpu.vector_store %arg3[%99, %c64_38], %98 {strides = array<i32>} : memref<8x128xf32, #tpu.memory_space<vmem>>, vector<1x32xf32>,
    %c4_i32_39 = arith.constant 4 : i32
    %101 = arith.muli %c2_i32_26, %c4_i32_39 : i32
    %102 = arith.addi %1, %101 : i32
    %c3_i32_40 = arith.constant 3 : i32
    %103 = arith.addi %102, %c3_i32_40 : i32
    %104 = arith.index_cast %103 : i32 to index
    %105 = memref.load %arg1[%104] : memref<32xi32, #tpu.memory_space<smem>>
    %106 = arith.index_cast %105 : i32 to index
    %c0_41 = arith.constant 0 : index
    %107 = vector.load %arg2[%106, %c0_41] : memref<64x32xf32, #tpu.memory_space<vmem>>, vector<1x32xf32>
    %108 = arith.index_cast %c2_i32_26 : i32 to index
    %c96_42 = arith.constant 96 : index
    %109 = vector.load %arg3[%108, %c96_42] : memref<8x128xf32, #tpu.memory_space<vmem>>, vector<1x32xf32>
    tpu.vector_store %arg3[%108, %c96_42], %107 {strides = array<i32>} : memref<8x128xf32, #tpu.memory_space<vmem>>, vector<1x32xf32>,
    %c3_i32_43 = arith.constant 3 : i32
    %c4_i32_44 = arith.constant 4 : i32
    %110 = arith.muli %c3_i32_43, %c4_i32_44 : i32
    %111 = arith.addi %1, %110 : i32
    %c0_i32_45 = arith.constant 0 : i32
    %112 = arith.addi %111, %c0_i32_45 : i32
    %113 = arith.index_cast %112 : i32 to index
    %114 = memref.load %arg1[%113] : memref<32xi32, #tpu.memory_space<smem>>
    %115 = arith.index_cast %114 : i32 to index
    %c0_46 = arith.constant 0 : index
    %116 = vector.load %arg2[%115, %c0_46] : memref<64x32xf32, #tpu.memory_space<vmem>>, vector<1x32xf32>
    %117 = arith.index_cast %c3_i32_43 : i32 to index
    %c0_47 = arith.constant 0 : index
    %118 = vector.load %arg3[%117, %c0_47] : memref<8x128xf32, #tpu.memory_space<vmem>>, vector<1x32xf32>
    tpu.vector_store %arg3[%117, %c0_47], %116 {strides = array<i32>} : memref<8x128xf32, #tpu.memory_space<vmem>>, vector<1x32xf32>,
    %c4_i32_48 = arith.constant 4 : i32
    %119 = arith.muli %c3_i32_43, %c4_i32_48 : i32
    %120 = arith.addi %1, %119 : i32
    %c1_i32_49 = arith.constant 1 : i32
    %121 = arith.addi %120, %c1_i32_49 : i32
    %122 = arith.index_cast %121 : i32 to index
    %123 = memref.load %arg1[%122] : memref<32xi32, #tpu.memory_space<smem>>
    %124 = arith.index_cast %123 : i32 to index
    %c0_50 = arith.constant 0 : index
    %125 = vector.load %arg2[%124, %c0_50] : memref<64x32xf32, #tpu.memory_space<vmem>>, vector<1x32xf32>
    %126 = arith.index_cast %c3_i32_43 : i32 to index
    %c32_51 = arith.constant 32 : index
    %127 = vector.load %arg3[%126, %c32_51] : memref<8x128xf32, #tpu.memory_space<vmem>>, vector<1x32xf32>
    tpu.vector_store %arg3[%126, %c32_51], %125 {strides = array<i32>} : memref<8x128xf32, #tpu.memory_space<vmem>>, vector<1x32xf32>,
    %c4_i32_52 = arith.constant 4 : i32
    %128 = arith.muli %c3_i32_43, %c4_i32_52 : i32
    %129 = arith.addi %1, %128 : i32
    %c2_i32_53 = arith.constant 2 : i32
    %130 = arith.addi %129, %c2_i32_53 : i32
    %131 = arith.index_cast %130 : i32 to index
    %132 = memref.load %arg1[%131] : memref<32xi32, #tpu.memory_space<smem>>
    %133 = arith.index_cast %132 : i32 to index
    %c0_54 = arith.constant 0 : index
    %134 = vector.load %arg2[%133, %c0_54] : memref<64x32xf32, #tpu.memory_space<vmem>>, vector<1x32xf32>
    %135 = arith.index_cast %c3_i32_43 : i32 to index
    %c64_55 = arith.constant 64 : index
    %136 = vector.load %arg3[%135, %c64_55] : memref<8x128xf32, #tpu.memory_space<vmem>>, vector<1x32xf32>
    tpu.vector_store %arg3[%135, %c64_55], %134 {strides = array<i32>} : memref<8x128xf32, #tpu.memory_space<vmem>>, vector<1x32xf32>,
    %c4_i32_56 = arith.constant 4 : i32
    %137 = arith.muli %c3_i32_43, %c4_i32_56 : i32
    %138 = arith.addi %1, %137 : i32
    %c3_i32_57 = arith.constant 3 : i32
    %139 = arith.addi %138, %c3_i32_57 : i32
    %140 = arith.index_cast %139 : i32 to index
    %141 = memref.load %arg1[%140] : memref<32xi32, #tpu.memory_space<smem>>
    %142 = arith.index_cast %141 : i32 to index
    %c0_58 = arith.constant 0 : index
    %143 = vector.load %arg2[%142, %c0_58] : memref<64x32xf32, #tpu.memory_space<vmem>>, vector<1x32xf32>
    %144 = arith.index_cast %c3_i32_43 : i32 to index
    %c96_59 = arith.constant 96 : index
    %145 = vector.load %arg3[%144, %c96_59] : memref<8x128xf32, #tpu.memory_space<vmem>>, vector<1x32xf32>
    tpu.vector_store %arg3[%144, %c96_59], %143 {strides = array<i32>} : memref<8x128xf32, #tpu.memory_space<vmem>>, vector<1x32xf32>,
    %c4_i32_60 = arith.constant 4 : i32
    %c4_i32_61 = arith.constant 4 : i32
    %146 = arith.muli %c4_i32_60, %c4_i32_61 : i32
    %147 = arith.addi %1, %146 : i32
    %c0_i32_62 = arith.constant 0 : i32
    %148 = arith.addi %147, %c0_i32_62 : i32
    %149 = arith.index_cast %148 : i32 to index
    %150 = memref.load %arg1[%149] : memref<32xi32, #tpu.memory_space<smem>>
    %151 = arith.index_cast %150 : i32 to index
    %c0_63 = arith.constant 0 : index
    %152 = vector.load %arg2[%151, %c0_63] : memref<64x32xf32, #tpu.memory_space<vmem>>, vector<1x32xf32>
    %153 = arith.index_cast %c4_i32_60 : i32 to index
    %c0_64 = arith.constant 0 : index
    %154 = vector.load %arg3[%153, %c0_64] : memref<8x128xf32, #tpu.memory_space<vmem>>, vector<1x32xf32>
    tpu.vector_store %arg3[%153, %c0_64], %152 {strides = array<i32>} : memref<8x128xf32, #tpu.memory_space<vmem>>, vector<1x32xf32>,
    %c4_i32_65 = arith.constant 4 : i32
    %155 = arith.muli %c4_i32_60, %c4_i32_65 : i32
    %156 = arith.addi %1, %155 : i32
    %c1_i32_66 = arith.constant 1 : i32
    %157 = arith.addi %156, %c1_i32_66 : i32
    %158 = arith.index_cast %157 : i32 to index
    %159 = memref.load %arg1[%158] : memref<32xi32, #tpu.memory_space<smem>>
    %160 = arith.index_cast %159 : i32 to index
    %c0_67 = arith.constant 0 : index
    %161 = vector.load %arg2[%160, %c0_67] : memref<64x32xf32, #tpu.memory_space<vmem>>, vector<1x32xf32>
    %162 = arith.index_cast %c4_i32_60 : i32 to index
    %c32_68 = arith.constant 32 : index
    %163 = vector.load %arg3[%162, %c32_68] : memref<8x128xf32, #tpu.memory_space<vmem>>, vector<1x32xf32>
    tpu.vector_store %arg3[%162, %c32_68], %161 {strides = array<i32>} : memref<8x128xf32, #tpu.memory_space<vmem>>, vector<1x32xf32>,
    %c4_i32_69 = arith.constant 4 : i32
    %164 = arith.muli %c4_i32_60, %c4_i32_69 : i32
    %165 = arith.addi %1, %164 : i32
    %c2_i32_70 = arith.constant 2 : i32
    %166 = arith.addi %165, %c2_i32_70 : i32
    %167 = arith.index_cast %166 : i32 to index
    %168 = memref.load %arg1[%167] : memref<32xi32, #tpu.memory_space<smem>>
    %169 = arith.index_cast %168 : i32 to index
    %c0_71 = arith.constant 0 : index
    %170 = vector.load %arg2[%169, %c0_71] : memref<64x32xf32, #tpu.memory_space<vmem>>, vector<1x32xf32>
    %171 = arith.index_cast %c4_i32_60 : i32 to index
    %c64_72 = arith.constant 64 : index
    %172 = vector.load %arg3[%171, %c64_72] : memref<8x128xf32, #tpu.memory_space<vmem>>, vector<1x32xf32>
    tpu.vector_store %arg3[%171, %c64_72], %170 {strides = array<i32>} : memref<8x128xf32, #tpu.memory_space<vmem>>, vector<1x32xf32>,
    %c4_i32_73 = arith.constant 4 : i32
    %173 = arith.muli %c4_i32_60, %c4_i32_73 : i32
    %174 = arith.addi %1, %173 : i32
    %c3_i32_74 = arith.constant 3 : i32
    %175 = arith.addi %174, %c3_i32_74 : i32
    %176 = arith.index_cast %175 : i32 to index
    %177 = memref.load %arg1[%176] : memref<32xi32, #tpu.memory_space<smem>>
    %178 = arith.index_cast %177 : i32 to index
    %c0_75 = arith.constant 0 : index
    %179 = vector.load %arg2[%178, %c0_75] : memref<64x32xf32, #tpu.memory_space<vmem>>, vector<1x32xf32>
    %180 = arith.index_cast %c4_i32_60 : i32 to index
    %c96_76 = arith.constant 96 : index
    %181 = vector.load %arg3[%180, %c96_76] : memref<8x128xf32, #tpu.memory_space<vmem>>, vector<1x32xf32>
    tpu.vector_store %arg3[%180, %c96_76], %179 {strides = array<i32>} : memref<8x128xf32, #tpu.memory_space<vmem>>, vector<1x32xf32>,
    %c5_i32 = arith.constant 5 : i32
    %c4_i32_77 = arith.constant 4 : i32
    %182 = arith.muli %c5_i32, %c4_i32_77 : i32
    %183 = arith.addi %1, %182 : i32
    %c0_i32_78 = arith.constant 0 : i32
    %184 = arith.addi %183, %c0_i32_78 : i32
    %185 = arith.index_cast %184 : i32 to index
    %186 = memref.load %arg1[%185] : memref<32xi32, #tpu.memory_space<smem>>
    %187 = arith.index_cast %186 : i32 to index
    %c0_79 = arith.constant 0 : index
    %188 = vector.load %arg2[%187, %c0_79] : memref<64x32xf32, #tpu.memory_space<vmem>>, vector<1x32xf32>
    %189 = arith.index_cast %c5_i32 : i32 to index
    %c0_80 = arith.constant 0 : index
    %190 = vector.load %arg3[%189, %c0_80] : memref<8x128xf32, #tpu.memory_space<vmem>>, vector<1x32xf32>
    tpu.vector_store %arg3[%189, %c0_80], %188 {strides = array<i32>} : memref<8x128xf32, #tpu.memory_space<vmem>>, vector<1x32xf32>,
    %c4_i32_81 = arith.constant 4 : i32
    %191 = arith.muli %c5_i32, %c4_i32_81 : i32
    %192 = arith.addi %1, %191 : i32
    %c1_i32_82 = arith.constant 1 : i32
    %193 = arith.addi %192, %c1_i32_82 : i32
    %194 = arith.index_cast %193 : i32 to index
    %195 = memref.load %arg1[%194] : memref<32xi32, #tpu.memory_space<smem>>
    %196 = arith.index_cast %195 : i32 to index
    %c0_83 = arith.constant 0 : index
    %197 = vector.load %arg2[%196, %c0_83] : memref<64x32xf32, #tpu.memory_space<vmem>>, vector<1x32xf32>
    %198 = arith.index_cast %c5_i32 : i32 to index
    %c32_84 = arith.constant 32 : index
    %199 = vector.load %arg3[%198, %c32_84] : memref<8x128xf32, #tpu.memory_space<vmem>>, vector<1x32xf32>
    tpu.vector_store %arg3[%198, %c32_84], %197 {strides = array<i32>} : memref<8x128xf32, #tpu.memory_space<vmem>>, vector<1x32xf32>,
    %c4_i32_85 = arith.constant 4 : i32
    %200 = arith.muli %c5_i32, %c4_i32_85 : i32
    %201 = arith.addi %1, %200 : i32
    %c2_i32_86 = arith.constant 2 : i32
    %202 = arith.addi %201, %c2_i32_86 : i32
    %203 = arith.index_cast %202 : i32 to index
    %204 = memref.load %arg1[%203] : memref<32xi32, #tpu.memory_space<smem>>
    %205 = arith.index_cast %204 : i32 to index
    %c0_87 = arith.constant 0 : index
    %206 = vector.load %arg2[%205, %c0_87] : memref<64x32xf32, #tpu.memory_space<vmem>>, vector<1x32xf32>
    %207 = arith.index_cast %c5_i32 : i32 to index
    %c64_88 = arith.constant 64 : index
    %208 = vector.load %arg3[%207, %c64_88] : memref<8x128xf32, #tpu.memory_space<vmem>>, vector<1x32xf32>
    tpu.vector_store %arg3[%207, %c64_88], %206 {strides = array<i32>} : memref<8x128xf32, #tpu.memory_space<vmem>>, vector<1x32xf32>,
    %c4_i32_89 = arith.constant 4 : i32
    %209 = arith.muli %c5_i32, %c4_i32_89 : i32
    %210 = arith.addi %1, %209 : i32
    %c3_i32_90 = arith.constant 3 : i32
    %211 = arith.addi %210, %c3_i32_90 : i32
    %212 = arith.index_cast %211 : i32 to index
    %213 = memref.load %arg1[%212] : memref<32xi32, #tpu.memory_space<smem>>
    %214 = arith.index_cast %213 : i32 to index
    %c0_91 = arith.constant 0 : index
    %215 = vector.load %arg2[%214, %c0_91] : memref<64x32xf32, #tpu.memory_space<vmem>>, vector<1x32xf32>
    %216 = arith.index_cast %c5_i32 : i32 to index
    %c96_92 = arith.constant 96 : index
    %217 = vector.load %arg3[%216, %c96_92] : memref<8x128xf32, #tpu.memory_space<vmem>>, vector<1x32xf32>
    tpu.vector_store %arg3[%216, %c96_92], %215 {strides = array<i32>} : memref<8x128xf32, #tpu.memory_space<vmem>>, vector<1x32xf32>,
    %c6_i32 = arith.constant 6 : i32
    %c4_i32_93 = arith.constant 4 : i32
    %218 = arith.muli %c6_i32, %c4_i32_93 : i32
    %219 = arith.addi %1, %218 : i32
    %c0_i32_94 = arith.constant 0 : i32
    %220 = arith.addi %219, %c0_i32_94 : i32
    %221 = arith.index_cast %220 : i32 to index
    %222 = memref.load %arg1[%221] : memref<32xi32, #tpu.memory_space<smem>>
    %223 = arith.index_cast %222 : i32 to index
    %c0_95 = arith.constant 0 : index
    %224 = vector.load %arg2[%223, %c0_95] : memref<64x32xf32, #tpu.memory_space<vmem>>, vector<1x32xf32>
    %225 = arith.index_cast %c6_i32 : i32 to index
    %c0_96 = arith.constant 0 : index
    %226 = vector.load %arg3[%225, %c0_96] : memref<8x128xf32, #tpu.memory_space<vmem>>, vector<1x32xf32>
    tpu.vector_store %arg3[%225, %c0_96], %224 {strides = array<i32>} : memref<8x128xf32, #tpu.memory_space<vmem>>, vector<1x32xf32>,
    %c4_i32_97 = arith.constant 4 : i32
    %227 = arith.muli %c6_i32, %c4_i32_97 : i32
    %228 = arith.addi %1, %227 : i32
    %c1_i32_98 = arith.constant 1 : i32
    %229 = arith.addi %228, %c1_i32_98 : i32
    %230 = arith.index_cast %229 : i32 to index
    %231 = memref.load %arg1[%230] : memref<32xi32, #tpu.memory_space<smem>>
    %232 = arith.index_cast %231 : i32 to index
    %c0_99 = arith.constant 0 : index
    %233 = vector.load %arg2[%232, %c0_99] : memref<64x32xf32, #tpu.memory_space<vmem>>, vector<1x32xf32>
    %234 = arith.index_cast %c6_i32 : i32 to index
    %c32_100 = arith.constant 32 : index
    %235 = vector.load %arg3[%234, %c32_100] : memref<8x128xf32, #tpu.memory_space<vmem>>, vector<1x32xf32>
    tpu.vector_store %arg3[%234, %c32_100], %233 {strides = array<i32>} : memref<8x128xf32, #tpu.memory_space<vmem>>, vector<1x32xf32>,
    %c4_i32_101 = arith.constant 4 : i32
    %236 = arith.muli %c6_i32, %c4_i32_101 : i32
    %237 = arith.addi %1, %236 : i32
    %c2_i32_102 = arith.constant 2 : i32
    %238 = arith.addi %237, %c2_i32_102 : i32
    %239 = arith.index_cast %238 : i32 to index
    %240 = memref.load %arg1[%239] : memref<32xi32, #tpu.memory_space<smem>>
    %241 = arith.index_cast %240 : i32 to index
    %c0_103 = arith.constant 0 : index
    %242 = vector.load %arg2[%241, %c0_103] : memref<64x32xf32, #tpu.memory_space<vmem>>, vector<1x32xf32>
    %243 = arith.index_cast %c6_i32 : i32 to index
    %c64_104 = arith.constant 64 : index
    %244 = vector.load %arg3[%243, %c64_104] : memref<8x128xf32, #tpu.memory_space<vmem>>, vector<1x32xf32>
    tpu.vector_store %arg3[%243, %c64_104], %242 {strides = array<i32>} : memref<8x128xf32, #tpu.memory_space<vmem>>, vector<1x32xf32>,
    %c4_i32_105 = arith.constant 4 : i32
    %245 = arith.muli %c6_i32, %c4_i32_105 : i32
    %246 = arith.addi %1, %245 : i32
    %c3_i32_106 = arith.constant 3 : i32
    %247 = arith.addi %246, %c3_i32_106 : i32
    %248 = arith.index_cast %247 : i32 to index
    %249 = memref.load %arg1[%248] : memref<32xi32, #tpu.memory_space<smem>>
    %250 = arith.index_cast %249 : i32 to index
    %c0_107 = arith.constant 0 : index
    %251 = vector.load %arg2[%250, %c0_107] : memref<64x32xf32, #tpu.memory_space<vmem>>, vector<1x32xf32>
    %252 = arith.index_cast %c6_i32 : i32 to index
    %c96_108 = arith.constant 96 : index
    %253 = vector.load %arg3[%252, %c96_108] : memref<8x128xf32, #tpu.memory_space<vmem>>, vector<1x32xf32>
    tpu.vector_store %arg3[%252, %c96_108], %251 {strides = array<i32>} : memref<8x128xf32, #tpu.memory_space<vmem>>, vector<1x32xf32>,
    %c7_i32 = arith.constant 7 : i32
    %c4_i32_109 = arith.constant 4 : i32
    %254 = arith.muli %c7_i32, %c4_i32_109 : i32
    %255 = arith.addi %1, %254 : i32
    %c0_i32_110 = arith.constant 0 : i32
    %256 = arith.addi %255, %c0_i32_110 : i32
    %257 = arith.index_cast %256 : i32 to index
    %258 = memref.load %arg1[%257] : memref<32xi32, #tpu.memory_space<smem>>
    %259 = arith.index_cast %258 : i32 to index
    %c0_111 = arith.constant 0 : index
    %260 = vector.load %arg2[%259, %c0_111] : memref<64x32xf32, #tpu.memory_space<vmem>>, vector<1x32xf32>
    %261 = arith.index_cast %c7_i32 : i32 to index
    %c0_112 = arith.constant 0 : index
    %262 = vector.load %arg3[%261, %c0_112] : memref<8x128xf32, #tpu.memory_space<vmem>>, vector<1x32xf32>
    tpu.vector_store %arg3[%261, %c0_112], %260 {strides = array<i32>} : memref<8x128xf32, #tpu.memory_space<vmem>>, vector<1x32xf32>,
    %c4_i32_113 = arith.constant 4 : i32
    %263 = arith.muli %c7_i32, %c4_i32_113 : i32
    %264 = arith.addi %1, %263 : i32
    %c1_i32_114 = arith.constant 1 : i32
    %265 = arith.addi %264, %c1_i32_114 : i32
    %266 = arith.index_cast %265 : i32 to index
    %267 = memref.load %arg1[%266] : memref<32xi32, #tpu.memory_space<smem>>
    %268 = arith.index_cast %267 : i32 to index
    %c0_115 = arith.constant 0 : index
    %269 = vector.load %arg2[%268, %c0_115] : memref<64x32xf32, #tpu.memory_space<vmem>>, vector<1x32xf32>
    %270 = arith.index_cast %c7_i32 : i32 to index
    %c32_116 = arith.constant 32 : index
    %271 = vector.load %arg3[%270, %c32_116] : memref<8x128xf32, #tpu.memory_space<vmem>>, vector<1x32xf32>
    tpu.vector_store %arg3[%270, %c32_116], %269 {strides = array<i32>} : memref<8x128xf32, #tpu.memory_space<vmem>>, vector<1x32xf32>,
    %c4_i32_117 = arith.constant 4 : i32
    %272 = arith.muli %c7_i32, %c4_i32_117 : i32
    %273 = arith.addi %1, %272 : i32
    %c2_i32_118 = arith.constant 2 : i32
    %274 = arith.addi %273, %c2_i32_118 : i32
    %275 = arith.index_cast %274 : i32 to index
    %276 = memref.load %arg1[%275] : memref<32xi32, #tpu.memory_space<smem>>
    %277 = arith.index_cast %276 : i32 to index
    %c0_119 = arith.constant 0 : index
    %278 = vector.load %arg2[%277, %c0_119] : memref<64x32xf32, #tpu.memory_space<vmem>>, vector<1x32xf32>
    %279 = arith.index_cast %c7_i32 : i32 to index
    %c64_120 = arith.constant 64 : index
    %280 = vector.load %arg3[%279, %c64_120] : memref<8x128xf32, #tpu.memory_space<vmem>>, vector<1x32xf32>
    tpu.vector_store %arg3[%279, %c64_120], %278 {strides = array<i32>} : memref<8x128xf32, #tpu.memory_space<vmem>>, vector<1x32xf32>,
    %c4_i32_121 = arith.constant 4 : i32
    %281 = arith.muli %c7_i32, %c4_i32_121 : i32
    %282 = arith.addi %1, %281 : i32
    %c3_i32_122 = arith.constant 3 : i32
    %283 = arith.addi %282, %c3_i32_122 : i32
    %284 = arith.index_cast %283 : i32 to index
    %285 = memref.load %arg1[%284] : memref<32xi32, #tpu.memory_space<smem>>
    %286 = arith.index_cast %285 : i32 to index
    %c0_123 = arith.constant 0 : index
    %287 = vector.load %arg2[%286, %c0_123] : memref<64x32xf32, #tpu.memory_space<vmem>>, vector<1x32xf32>
    %288 = arith.index_cast %c7_i32 : i32 to index
    %c96_124 = arith.constant 96 : index
    %289 = vector.load %arg3[%288, %c96_124] : memref<8x128xf32, #tpu.memory_space<vmem>>, vector<1x32xf32>
    tpu.vector_store %arg3[%288, %c96_124], %287 {strides = array<i32>} : memref<8x128xf32, #tpu.memory_space<vmem>>, vector<1x32xf32>,
    %c8_i32_125 = arith.constant 8 : i32
    return
  }
  func.func @transform_0(%arg0: i32, %arg1: memref<32xi32, #tpu.memory_space<smem>>) -> (i32, i32) {
    %c0_i32 = arith.constant 0 : i32
    %c0_i32_0 = arith.constant 0 : i32
    %c0_i32_1 = arith.constant 0 : i32
    return %c0_i32, %c0_i32_0 : i32, i32
  }
  func.func @transform_1(%arg0: i32, %arg1: memref<32xi32, #tpu.memory_space<smem>>) -> (i32, i32) {
    %c0_i32 = arith.constant 0 : i32
    %c0_i32_0 = arith.constant 0 : i32
    return %arg0, %c0_i32 : i32, i32
  }
}

</mosaic_0001>

<bundles_post_ra>
// kernel: tpu_custom_call.1
= control target key start
LH: loop header
LB: loop body
LE: loop exit
PB: predicated region body
PF: predicated region fallthrough
CT: control target
= control target key end

     0   :  { %s623_s0 = inlined_call_operand.vmem [shape: s32[32], index: 0, kind: input, shape index: {}]   ;;  %s624_s1 = inlined_call_operand.vmem [shape: f32[64,32], index: 1, kind: input, shape index: {}]   ;;  %s625_s2 = inlined_call_operand.hbm [shape: f32[8,128], index: 2, kind: output, shape index: {}]  }
   0x1   :  { %s7_s11 = sshll.u32 %s623_s0, 4  ;;  %s8_s11 = int_to_ptr.vmem [resolvable:$true] %s7_s11 }
   0x2   :  { %s358_s12 = scalar_lea.vmem %s8_s11, 16  ;;  %p363_p1 = scmp.lt.s32.totalorder %s8_s11, %s8_s11 }
   0x3   :  { %p359_p0 = scmp.ne.s32.totalorder %s8_s11, %s358_s12  ;;  %p364_p2 = scmp.lt.s32.totalorder %s358_s12, %s358_s12 }
   0x5   :  { %p365_p3 = por %p364_p2, %p363_p1 }
   0x7   :  { %p366_p4 = pnand %p365_p3, %p359_p0 }
   0x9   :  { %369 = shalt.err (!%p366_p4)  }
   0xa   :  { %s396_s13 = smov [#allocation3]  }
   0xb   :  { %10 = dma.vmem_to_smem %s8_s11, 16, %s396_s13, [#allocation2] }
   0xc   :  { %392 = dma.done.wait [#allocation2], 16 }
   0xd   :  { %393 = vsyncadd [#allocation2], 4294967280 }
   0xe   :  { %12 = sfence }
   0xf   :  { %s330_s14 = sld [smem:[#allocation3 + $0x9]]  ;;  %s334_s16 = sld [smem:[#allocation3 + $0xd]] }
  0x10   :  { %s322_s15 = sld [smem:[#allocation3 + $0x1]] }
  0x11   :  { %13 = vsyncpa [#allocation5], 0  ;;  %s326_s17 = sld [smem:[#allocation3 + $0x5]]  ;;  %s338_s0 = sld [smem:[#allocation3 + $0x11]]  ;;  %vm20_vm0 = vcmask 253952   ;;  %vm30_vm1 = vcmask 516352  }
  0x12   :  { %s342_s18 = sld [smem:[#allocation3 + $0x15]]  ;;  %s346_s23 = sld [smem:[#allocation3 + $0x19]]  ;;  %vm40_vm2 = vcmask 778752   ;;  %vm50_vm3 = vcmask 1041152  }
  0x13   :  { %s350_s19 = sld [smem:[#allocation3 + $0x1d]]  ;;  %s397_s30 = smov 32  }
  0x14   :  { %s327_s9 = sld [smem:[#allocation3 + $0x6]]  ;;  %s323_s13 = sld [smem:[#allocation3 + $0x2]] }
  0x15   :  { %s91_s22 = scalar_lea.vmem %s624_s1, %s330_s14  ;;  %s123_s29 = scalar_lea.vmem %s624_s1, %s334_s16 }
  0x16   :  { %v92_v0 = vld [vmem:[%s91_s22] sm:$0x1]  ;;  %s24_s26 = scalar_lea.vmem %s624_s1, %s322_s15  ;;  %s440_s14 = sld [smem:[#allocation3 + $0xe]] }
  0x17   :  { %94 = vrot.lane.b32.xlu1 %v92_v0, %s397_s30  ;;  %v25_v1 = vld [vmem:[%s24_s26] sm:$0x1]  ;;  %s59_s5 = scalar_lea.vmem %s624_s1, %s326_s17  ;;  %s155_s12 = scalar_lea.vmem %s624_s1, %s338_s0 }
  0x18   :  { %27 = vrot.lane.b32.xlu0 %v25_v1, %s397_s30  ;;  %v124_v2 = vld [vmem:[%s123_s29] sm:$0x1]  ;;  %s187_s8 = scalar_lea.vmem %s624_s1, %s342_s18  ;;  %s446_s18 = sld [smem:[#allocation3 + $0xa]] }
  0x19   :  { %v60_v3 = vld [vmem:[%s59_s5] sm:$0x1]  ;;  %s251_s17 = scalar_lea.vmem %s624_s1, %s350_s19  ;;  %s219_s0 = scalar_lea.vmem %s624_s1, %s346_s23 }
  0x1a   :  { %v188_v4 = vld [vmem:[%s187_s8] sm:$0x1]  ;;  %s452_s22 = sld [smem:[#allocation3 + $0x16]]  ;;  %s68_s26 = scalar_lea.vmem %s624_s1, %s327_s9 }
  0x1b   :  { %126 = vrot.lane.b32.xlu1 %v124_v2, %s397_s30  ;;  %v156_v5 = vld [vmem:[%s155_s12] sm:$0x1]  ;;  %s458_s19 = sld [smem:[#allocation3 + $0x12]]  ;;  %s34_s23 = scalar_lea.vmem %s624_s1, %s323_s13 }
  0x1c   :  { %62 = vrot.lane.b32.xlu0 %v60_v3, %s397_s30  ;;  %v252_v6 = vld [vmem:[%s251_s17] sm:$0x1]  ;;  %s132_s4 = scalar_lea.vmem %s624_s1, %s440_s14  ;;  %s468_s5 = sld [smem:[#allocation3 + $0x1e]] }
  0x1d   :  { %v220_v7 = vld [vmem:[%s219_s0] sm:$0x1]  ;;  %s471_s6 = sld [smem:[#allocation3 + $0x1a]]  ;;  %s473_s7 = sld [smem:[#allocation3 + $0x7]] }
  0x1e   :  { %v69_v8 = vld [vmem:[%s68_s26] sm:$0x1]  ;;  %s100_s10 = scalar_lea.vmem %s624_s1, %s446_s18  ;;  %s479_s11 = sld [smem:[#allocation3 + $0x3]] }
  0x1f   :  { %190 = vrot.lane.b32.xlu1 %v188_v4, %s397_s30  ;;  %v35_v9 = vld [vmem:[%s34_s23] sm:$0x1]  ;;  %s481_s12 = sld [smem:[#allocation3 + $0xf]]  ;;  %s483_s13 = sld [smem:[#allocation3 + $0xb]] }
  0x20   :  { %158 = vrot.lane.b32.xlu0 %v156_v5, %s397_s30  ;;  %s398_s14 = smov 64   ;;  %s196_s16 = scalar_lea.vmem %s624_s1, %s452_s22  ;;  %v133_v10 = vld [vmem:[%s132_s4] sm:$0x1] }
  0x21   :  { %s329_s17 = sld [smem:[#allocation3 + $0x8]]  ;;  %s333_s18 = sld [smem:[#allocation3 + $0xc]]  ;;  %v101_v11 = vld [vmem:[%s100_s10] sm:$0x1] }
  0x22   :  { %s17_s20 = sld [smem:[#allocation3]]  ;;  %s164_s24 = scalar_lea.vmem %s624_s1, %s458_s19  ;;  %v197_v12 = vld [vmem:[%s196_s16] sm:$0x1] }
  0x23   :  { %254 = vrot.lane.b32.xlu1 %v252_v6, %s397_s30  ;;  %s325_s25 = sld [smem:[#allocation3 + $0x4]]  ;;  %s497_s27 = sld [smem:[#allocation3 + $0x10]]  ;;  %v165_v13 = vld [vmem:[%s164_s24] sm:$0x1] }
  0x24   :  { %222 = vrot.lane.b32.xlu0 %v220_v7, %s397_s30  ;;  %s495_s26 = sld [smem:[#allocation3 + $0x14]]  ;;  %s500_s22 = sld [smem:[#allocation3 + $0x17]] }
  0x25   :  { %s502_s28 = sld [smem:[#allocation3 + $0x1c]]  ;;  %s260_s3 = scalar_lea.vmem %s624_s1, %s468_s5 }
  0x26   :  { %s509_s19 = sld [smem:[#allocation3 + $0x18]]  ;;  %s228_s9 = scalar_lea.vmem %s624_s1, %s471_s6  ;;  %v261_v17 = vld [vmem:[%s260_s3] sm:$0x1] }
  0x27   :  { %71 = vrot.lane.b32.xlu1 %v69_v8, %s398_s14  ;;  %s86_s15 = scalar_lea.vmem %s624_s1, %s329_s17  ;;  %s118_s24 = scalar_lea.vmem %s624_s1, %s333_s18  ;;  %v229_v19 = vld [vmem:[%s228_s9] sm:$0x1] }
  0x28   :  { %37 = vrot.lane.b32.xlu0 %v35_v9, %s398_s14  ;;  %v87_v14 = vld [vmem:[%s86_s15] sm:$0x1]  ;;  %s18_s0 = scalar_lea.vmem %s624_s1, %s17_s20  ;;  %s525_s29 = sld [smem:[#allocation3 + $0x13]] }
  0x29   :  { %88 = vst.msk [vmem:[#allocation4 + $0x2] sm:$0x1] %vm20_vm0, %v87_v14  ;;  %v19_v15 = vld [vmem:[%s18_s0] sm:$0x1]  ;;  %s54_s4 = scalar_lea.vmem %s624_s1, %s325_s25  ;;  %s150_s15 = scalar_lea.vmem %s624_s1, %s497_s27 }
  0x2a   :  { %v119_v16 = vld [vmem:[%s118_s24] sm:$0x1]  ;;  %21 = vst.msk [vmem:[#allocation4] sm:$0x1] %vm20_vm0, %v19_v15  ;;  %s182_s8 = scalar_lea.vmem %s624_s1, %s495_s26  ;;  %s77_s21 = scalar_lea.vmem %s624_s1, %s473_s7 }
  0x2b   :  { %135 = vrot.lane.b32.xlu1 %v133_v10, %s398_s14  ;;  %120 = vst.msk [vmem:[#allocation4 + $0x3] sm:$0x1] %vm20_vm0, %v119_v16  ;;  %v55_v18 = vld [vmem:[%s54_s4] sm:$0x1]  ;;  %s246_s5 = scalar_lea.vmem %s624_s1, %s502_s28  ;;  %s44_s24 = scalar_lea.vmem %s624_s1, %s479_s11 }
  0x2c   :  { %103 = vrot.lane.b32.xlu0 %v101_v11, %s398_s14  ;;  %56 = vst.msk [vmem:[#allocation4 + $0x1] sm:$0x1] %vm20_vm0, %v55_v18  ;;  %v183_v20 = vld [vmem:[%s182_s8] sm:$0x1]  ;;  %s214_s9 = scalar_lea.vmem %s624_s1, %s509_s19  ;;  %s141_s6 = scalar_lea.vmem %s624_s1, %s481_s12 }
  0x2d   :  { %v151_v21 = vld [vmem:[%s150_s15] sm:$0x1]  ;;  %184 = vst.msk [vmem:[#allocation4 + $0x5] sm:$0x1] %vm20_vm0, %v183_v20  ;;  %s352_s17 = sld [smem:[#allocation3 + $0x1f]]  ;;  %s109_s20 = scalar_lea.vmem %s624_s1, %s483_s13 }
  0x2e   :  { %152 = vst.msk [vmem:[#allocation4 + $0x4] sm:$0x1] %vm20_vm0, %v151_v21  ;;  %v247_v22 = vld [vmem:[%s246_s5] sm:$0x1]  ;;  %s348_s18 = sld [smem:[#allocation3 + $0x1b]]  ;;  %s399_s8 = smov 96  }
  0x2f   :  { %199 = vrot.lane.b32.xlu1 %v197_v12, %s398_s14  ;;  %248 = vst.msk [vmem:[#allocation4 + $0x7] sm:$0x1] %vm20_vm0, %v247_v22  ;;  %v215_v23 = vld [vmem:[%s214_s9] sm:$0x1]  ;;  %s205_s30 = scalar_lea.vmem %s624_s1, %s500_s22  ;;  %s173_s25 = scalar_lea.vmem %s624_s1, %s525_s29 }
  0x30   :  { %167 = vrot.lane.b32.xlu0 %v165_v13, %s398_s14  ;;  %v78_v24 = vld [vmem:[%s77_s21] sm:$0x1]  ;;  %216 = vst.msk [vmem:[#allocation4 + $0x6] sm:$0x1] %vm20_vm0, %v215_v23 }
  0x31   :  { %v45_v25 = vld [vmem:[%s44_s24] sm:$0x1] }
  0x32   :  { %v142_v26 = vld [vmem:[%s141_s6] sm:$0x1] }
  0x33   :  { %263 = vrot.lane.b32.xlu1 %v261_v17, %s398_s14  ;;  %v110_v27 = vld [vmem:[%s109_s20] sm:$0x1]  ;;  %s269_s21 = scalar_lea.vmem %s624_s1, %s352_s17 }
  0x34   :  { %231 = vrot.lane.b32.xlu0 %v229_v19, %s398_s14  ;;  %v206_v28 = vld [vmem:[%s205_s30] sm:$0x1]  ;;  %s237_s5 = scalar_lea.vmem %s624_s1, %s348_s18  ;;  %s400_s1 = smov [#allocation4]  }
  0x35   :  { %v174_v29 = vld [vmem:[%s173_s25] sm:$0x1]  ;;  %s282_s22 = sshll.u32 %s400_s1, 4  ;;  %s283_s22 = int_to_ptr.vmem [resolvable:$true] %s282_s22 }
  0x36   :  { %v270_v30 = vld [vmem:[%s269_s21] sm:$0x1]  ;;  %s370_s29 = scalar_lea.vmem %s283_s22, 128  ;;  %p375_p6 = scmp.lt.s32.totalorder %s283_s22, %s283_s22 }
  0x37   :  { %80 = vrot.lane.b32.xlu1 %v78_v24, %s399_s8  ;;  %v238_v31 = vld [vmem:[%s237_s5] sm:$0x1]  ;;  %p371_p5 = scmp.ne.s32.totalorder %s283_s22, %s370_s29  ;;  %p376_p7 = scmp.lt.s32.totalorder %s370_s29, %s370_s29 }
  0x38   :  { %47 = vrot.lane.b32.xlu0 %v45_v25, %s399_s8 }
  0x39   :  { %p377_p8 = por %p376_p7, %p375_p6 }
  0x3b   :  { %144 = vrot.lane.b32.xlu1 %v142_v26, %s399_s8  ;;  %p378_p9 = pnand %p377_p8, %p371_p5 }
  0x3c   :  { %112 = vrot.lane.b32.xlu0 %v110_v27, %s399_s8 }
  0x3f   :  { %208 = vrot.lane.b32.xlu1 %v206_v28, %s399_s8 }
  0x40   :  { %176 = vrot.lane.b32.xlu0 %v174_v29, %s399_s8 }
  0x43   :  { %272 = vrot.lane.b32.xlu1 %v270_v30, %s399_s8 }
  0x44   :  { %240 = vrot.lane.b32.xlu0 %v238_v31, %s399_s8 }
  0x89   :  { %v95_v32 = vpop.permute.xlu1 %94 }
  0x8a   :  { %97 = vst.msk [vmem:[#allocation4 + $0x2] sm:$0x1] %vm30_vm1, %v95_v32  ;;  %v28_v33 = vpop.permute.xlu0 %27 }
  0x8b   :  { %31 = vst.msk [vmem:[#allocation4] sm:$0x1] %vm30_vm1, %v28_v33 }
  0x8d   :  { %v127_v34 = vpop.permute.xlu1 %126 }
  0x8e   :  { %129 = vst.msk [vmem:[#allocation4 + $0x3] sm:$0x1] %vm30_vm1, %v127_v34  ;;  %v63_v35 = vpop.permute.xlu0 %62 }
  0x8f   :  { %65 = vst.msk [vmem:[#allocation4 + $0x1] sm:$0x1] %vm30_vm1, %v63_v35 }
  0x91   :  { %v191_v36 = vpop.permute.xlu1 %190 }
  0x92   :  { %193 = vst.msk [vmem:[#allocation4 + $0x5] sm:$0x1] %vm30_vm1, %v191_v36  ;;  %v159_v37 = vpop.permute.xlu0 %158 }
  0x93   :  { %161 = vst.msk [vmem:[#allocation4 + $0x4] sm:$0x1] %vm30_vm1, %v159_v37 }
  0x95   :  { %v255_v38 = vpop.permute.xlu1 %254 }
  0x96   :  { %257 = vst.msk [vmem:[#allocation4 + $0x7] sm:$0x1] %vm30_vm1, %v255_v38  ;;  %v223_v39 = vpop.permute.xlu0 %222 }
  0x97   :  { %225 = vst.msk [vmem:[#allocation4 + $0x6] sm:$0x1] %vm30_vm1, %v223_v39 }
  0x99   :  { %v72_v40 = vpop.permute.xlu1 %71 }
  0x9a   :  { %74 = vst.msk [vmem:[#allocation4 + $0x1] sm:$0x1] %vm40_vm2, %v72_v40  ;;  %v38_v41 = vpop.permute.xlu0 %37 }
  0x9b   :  { %41 = vst.msk [vmem:[#allocation4] sm:$0x1] %vm40_vm2, %v38_v41 }
  0x9d   :  { %v136_v42 = vpop.permute.xlu1 %135 }
  0x9e   :  { %138 = vst.msk [vmem:[#allocation4 + $0x3] sm:$0x1] %vm40_vm2, %v136_v42  ;;  %v104_v43 = vpop.permute.xlu0 %103 }
  0x9f   :  { %106 = vst.msk [vmem:[#allocation4 + $0x2] sm:$0x1] %vm40_vm2, %v104_v43 }
  0xa1   :  { %v200_v44 = vpop.permute.xlu1 %199 }
  0xa2   :  { %202 = vst.msk [vmem:[#allocation4 + $0x5] sm:$0x1] %vm40_vm2, %v200_v44  ;;  %v168_v45 = vpop.permute.xlu0 %167 }
  0xa3   :  { %170 = vst.msk [vmem:[#allocation4 + $0x4] sm:$0x1] %vm40_vm2, %v168_v45 }
  0xa5   :  { %v264_v46 = vpop.permute.xlu1 %263 }
  0xa6   :  { %266 = vst.msk [vmem:[#allocation4 + $0x7] sm:$0x1] %vm40_vm2, %v264_v46  ;;  %v232_v47 = vpop.permute.xlu0 %231 }
  0xa7   :  { %234 = vst.msk [vmem:[#allocation4 + $0x6] sm:$0x1] %vm40_vm2, %v232_v47 }
  0xa9   :  { %v81_v48 = vpop.permute.xlu1 %80 }
  0xaa   :  { %83 = vst.msk [vmem:[#allocation4 + $0x1] sm:$0x1] %vm50_vm3, %v81_v48  ;;  %v48_v49 = vpop.permute.xlu0 %47 }
  0xab   :  { %51 = vst.msk [vmem:[#allocation4] sm:$0x1] %vm50_vm3, %v48_v49 }
  0xad   :  { %v145_v50 = vpop.permute.xlu1 %144 }
  0xae   :  { %147 = vst.msk [vmem:[#allocation4 + $0x3] sm:$0x1] %vm50_vm3, %v145_v50  ;;  %v113_v51 = vpop.permute.xlu0 %112 }
  0xaf   :  { %115 = vst.msk [vmem:[#allocation4 + $0x2] sm:$0x1] %vm50_vm3, %v113_v51 }
  0xb1   :  { %v209_v52 = vpop.permute.xlu1 %208 }
  0xb2   :  { %211 = vst.msk [vmem:[#allocation4 + $0x5] sm:$0x1] %vm50_vm3, %v209_v52  ;;  %v177_v53 = vpop.permute.xlu0 %176 }
  0xb3   :  { %179 = vst.msk [vmem:[#allocation4 + $0x4] sm:$0x1] %vm50_vm3, %v177_v53 }
  0xb5   :  { %v273_v54 = vpop.permute.xlu1 %272 }
  0xb6   :  { %275 = vst.msk [vmem:[#allocation4 + $0x7] sm:$0x1] %vm50_vm3, %v273_v54  ;;  %v241_v55 = vpop.permute.xlu0 %240 }
  0xb7   :  { %243 = vst.msk [vmem:[#allocation4 + $0x6] sm:$0x1] %vm50_vm3, %v241_v55 }
  0xb8   :  { %381 = shalt.err (!%p378_p9)
}
  0xb9   :  { %s382_s24 = scalar_lea.hbm %s625_s2, 128 }
  0xba   :  { %p383_p10 = scmp.ne.s32.totalorder %s625_s2, %s382_s24  ;;  %p386_p11 = scmp.lt.u32.totalorder %s382_s24, %s625_s2 }
  0xbc   :  { %p388_p12 = pnand %p386_p11, %p383_p10 }
  0xbe   :  { %391 = shalt.err (!%p388_p12)
}
  0xbf   :  { %285 = dma.vmem_to_hbm [thread:$0]  %s283_s22, 128, %s625_s2, [#allocation5]  }
  0xc0   :  { %394 = dma.done.wait [#allocation5], 128  }
  0xc1   :  { %395 = vsyncadd [#allocation5], 4294967168 }
  0xc2   :  { %289 = vsyncpa [#allocation5], 1 }

</bundles_post_ra>
